<compile_context>
chip_gen: v7x
topology: tpu7x:2x2x1
jax: 0.10.0
libtpu: 0.0.40
codegen_flags: <defaults>
</compile_context>

<pallas_src>
import functools
import math

import jax
import jax.numpy as jnp
from jax.experimental import pallas as pl
from jax.experimental.pallas import tpu as pltpu


def _round_up(n, m):
    return ((n + m - 1) // m) * m


# --------------------------------------------------------------------------- #
# Kernels
# --------------------------------------------------------------------------- #
def lora_attn_kernel(x_ref, wqkv_t_ref, a_t_ref, lproj_t_ref, wproj_t_ref,
                     bias_ref, o_ref):
    """Resident-weight path: all fused weights stay in VMEM across the row grid."""
    cdt = wqkv_t_ref.dtype                       # matmul operand dtype (bf16)
    x = x_ref[...].astype(cdt)                   # [tn, Hp]

    # Fused base projection: lanes [0:Hp)=q, [Hp:2Hp)=k, [2Hp:3Hp)=v (f32 acc).
    qkv = jnp.dot(x, wqkv_t_ref[...], preferred_element_type=jnp.float32)

    # Output projection over K = 3Hp  (== proj(concat([q, k, v], -1))).
    out = jnp.dot(qkv.astype(cdt), wproj_t_ref[...],
                  preferred_element_type=jnp.float32)                 # [tn, Hp]

    # LoRA branch with B folded into proj at prep time (eval-mode dropout == id):
    #   out += (x @ [Aq^T|Av^T]) @ [s*Bq^T Wp_q^T ; s*Bv^T Wp_v^T]
    xa = jnp.dot(x, a_t_ref[...], preferred_element_type=jnp.float32)  # [tn, 2r]
    out = out + jnp.dot(xa.astype(cdt), lproj_t_ref[...],
                        preferred_element_type=jnp.float32)

    o_ref[...] = (out + bias_ref[...]).astype(o_ref.dtype)


def lora_attn_chunked_kernel(x_ref, wqkv_t_ref, a_t_ref, lproj_t_ref, wproj_t_ref,
                             bias_ref, o_ref, acc_ref):
    """Large-H path: second grid axis tiles the 3Hp dimension; f32 accumulation."""
    j = pl.program_id(1)
    cdt = wqkv_t_ref.dtype
    x = x_ref[...].astype(cdt)                   # [tn, Hp] (resident across j)

    @pl.when(j == 0)
    def _():
        acc_ref[...] = jnp.zeros_like(acc_ref)

    qkv_c = jnp.dot(x, wqkv_t_ref[...], preferred_element_type=jnp.float32)  # [tn, tc]
    acc_ref[...] += jnp.dot(qkv_c.astype(cdt), wproj_t_ref[...],
                            preferred_element_type=jnp.float32)              # [tn, Hp]

    @pl.when(j == pl.num_programs(1) - 1)
    def _():
        xa = jnp.dot(x, a_t_ref[...], preferred_element_type=jnp.float32)
        out = acc_ref[...] + jnp.dot(xa.astype(cdt), lproj_t_ref[...],
                                     preferred_element_type=jnp.float32)
        o_ref[...] = (out + bias_ref[...]).astype(o_ref.dtype)


# --------------------------------------------------------------------------- #
# One-time weight preparation (call once, NOT per forward step)
# --------------------------------------------------------------------------- #
def prepare_params(qkv_w, proj_w, proj_b, lora_a_q, lora_b_q, lora_a_v, lora_b_v,
                   *, rank, alpha, compute_dtype=jnp.bfloat16):
    """Fuse / transpose / pad the PyTorch-layout parameters into lane-dense operands.

      wqkv_t : [Hp, 3Hp]   x @ wqkv_t -> [q | k | v] lane blocks
      a_t    : [Hp, r2]    x @ a_t    -> [x@Aq^T | x@Av^T]        (r2 = round_up(2r, 8))
      lproj_t: [r2, Hp]    scaling-folded  [Bq^T Wp_q^T ; Bv^T Wp_v^T]  (f32 fold)
      wproj_t: [3Hp, Hp]   fused-qkv @ wproj_t == concat([q,k,v]) @ proj_w^T
      bias   : [1, Hp]     f32
    Zero padding of the hidden dim to Hp = round_up(H, 128) is mathematically exact.
    """
    H = qkv_w.shape[1]
    r = rank
    scaling = float(alpha) / float(rank)
    Hp = _round_up(H, 128)
    r2 = _round_up(2 * r, 8)

    qkv_w = qkv_w.astype(jnp.float32)
    proj_w = proj_w.astype(jnp.float32)

    def pad2(w, rows, cols):
        return jnp.pad(w, ((0, rows - w.shape[0]), (0, cols - w.shape[1])))

    # q/k/v slices of the fused qkv weight, in x @ W^T orientation, lane-padded.
    wq_t = pad2(qkv_w[:H, :].T, Hp, Hp)
    wk_t = pad2(qkv_w[H:2 * H, :].T, Hp, Hp)
    wv_t = pad2(qkv_w[2 * H:, :].T, Hp, Hp)
    wqkv_t = jnp.concatenate([wq_t, wk_t, wv_t], axis=1)            # [Hp, 3Hp]

    # proj weight [H, 3H] -> split q/k/v column blocks, transpose, pad, stack rows.
    wpq_t = pad2(proj_w[:, :H].T, Hp, Hp)
    wpk_t = pad2(proj_w[:, H:2 * H].T, Hp, Hp)
    wpv_t = pad2(proj_w[:, 2 * H:].T, Hp, Hp)
    wproj_t = jnp.concatenate([wpq_t, wpk_t, wpv_t], axis=0)        # [3Hp, Hp]

    # Combined LoRA A^T.
    a_t = jnp.zeros((Hp, r2), jnp.float32)
    a_t = a_t.at[:H, :r].set(lora_a_q.T)
    a_t = a_t.at[:H, r:2 * r].set(lora_a_v.T)

    # Fold scaling * B^T @ Wproj_block^T in f32 (valid because eval-mode dropout is
    # identity) -> the LoRA branch becomes a single rank-2r correction to the output.
    lp_q = scaling * (lora_b_q.T @ proj_w[:, :H].T)                  # [r, H]
    lp_v = scaling * (lora_b_v.T @ proj_w[:, 2 * H:].T)              # [r, H]
    lproj_t = jnp.zeros((r2, Hp), jnp.float32)
    lproj_t = lproj_t.at[:r, :H].set(lp_q)
    lproj_t = lproj_t.at[r:2 * r, :H].set(lp_v)

    bias = jnp.pad(proj_b.astype(jnp.float32), (0, Hp - H)).reshape(1, Hp)

    return dict(
        wqkv_t=wqkv_t.astype(compute_dtype),
        a_t=a_t.astype(compute_dtype),
        lproj_t=lproj_t.astype(compute_dtype),
        wproj_t=wproj_t.astype(compute_dtype),
        bias=bias,
    )


# --------------------------------------------------------------------------- #
# Tiling / VMEM heuristics
# --------------------------------------------------------------------------- #
def _vmem_budget_bytes():
    """Generation-aware VMEM budget (~0.8 * capacity); conservative 64 MiB fallback."""
    try:
        cap = int(pltpu.get_tpu_info().vmem_capacity_bytes)
        return max(32 << 20, int(cap * 0.8))
    except Exception:
        return 64 << 20     # v7x per-TC VMEM


def _choose_tile_n(N, tile_n):
    tile_n = max(8, int(tile_n))
    tile_n = _round_up(tile_n, 128) if tile_n >= 128 else _round_up(tile_n, 8)
    if N >= 2 * tile_n:
        return tile_n
    if N > 128:
        # Few rows: split into (at least) two 128-aligned blocks so the "parallel"
        # row axis shards across both v7x TensorCores and stays MXU tile-aligned.
        return min(tile_n, max(128, _round_up(-(-N // 2), 128)))
    return _round_up(N, 8)


def _resident_bytes(Hp, r2, tn, wi, xi):
    w = (Hp * 3 * Hp + 3 * Hp * Hp + Hp * r2 + r2 * Hp) * wi + Hp * 4   # single-buffered
    act = 2 * (tn * Hp * xi) * 2                                        # x + out, 2-buffered
    interm = tn * (3 * Hp + Hp + r2) * 4                                # f32 results
    return w + act + interm + (2 << 20)


def _chunked_bytes(Hp, r2, tn, tc, wi, xi):
    w = 2 * (Hp * tc + tc * Hp) * wi                                    # big-weight chunks (2-buf)
    w += (Hp * r2 + r2 * Hp) * wi + Hp * 4                              # small resident operands
    act = 2 * (tn * Hp * xi) * 2
    scratch = tn * Hp * 4
    interm = tn * (tc + Hp + r2) * 4
    return w + act + scratch + interm + (2 << 20)


def _choose_chunk(Hp, r2, tn, wi, xi, budget):
    c = 3 * Hp
    while c >= 128:
        if (3 * Hp) % c == 0 and _chunked_bytes(Hp, r2, tn, c, wi, xi) <= budget:
            return c
        c -= 128
    return 128


# --------------------------------------------------------------------------- #
# Forward wrapper
# --------------------------------------------------------------------------- #
@functools.partial(jax.jit, static_argnames=("tile_n", "force_chunk_cols"))
def lora_attention_forward(x, wqkv_t, a_t, lproj_t, wproj_t, bias, *,
                           tile_n=512, force_chunk_cols=None):
    B, S, H = x.shape
    Hp = wqkv_t.shape[0]
    r2 = a_t.shape[1]
    N = B * S
    xi = x.dtype.itemsize
    wi = wqkv_t.dtype.itemsize

    x2d = x.reshape(N, H)
    if Hp != H:                                   # lane-pad hidden dim (exact zeros)
        x2d = jnp.pad(x2d, ((0, 0), (0, Hp - H)))

    budget = _vmem_budget_bytes()
    tn = _choose_tile_n(N, tile_n)

    use_chunked = force_chunk_cols is not None
    if not use_chunked:
        while tn > 128 and _resident_bytes(Hp, r2, tn, wi, xi) > budget:
            tn = max(128, tn // 2)
        use_chunked = _resident_bytes(Hp, r2, tn, wi, xi) > budget

    n_row_blocks = pl.cdiv(N, tn)                 # ragged last row block is fine
    compiler_params_1d = pltpu.CompilerParams(
        dimension_semantics=("parallel",), vmem_limit_bytes=int(budget))
    compiler_params_2d = pltpu.CompilerParams(
        dimension_semantics=("parallel", "arbitrary"), vmem_limit_bytes=int(budget))
    resident = pl.Buffered(1)                     # constant-index operands: 1 buffer

    if not use_chunked:
        out2d = pl.pallas_call(
            lora_attn_kernel,
            out_shape=jax.ShapeDtypeStruct((N, Hp), x.dtype),
            grid=(n_row_blocks,),
            in_specs=[
                pl.BlockSpec((tn, Hp), lambda i: (i, 0)),                      # x (streamed)
                pl.BlockSpec((Hp, 3 * Hp), lambda i: (0, 0), pipeline_mode=resident),
                pl.BlockSpec((Hp, r2), lambda i: (0, 0), pipeline_mode=resident),
                pl.BlockSpec((r2, Hp), lambda i: (0, 0), pipeline_mode=resident),
                pl.BlockSpec((3 * Hp, Hp), lambda i: (0, 0), pipeline_mode=resident),
                pl.BlockSpec((1, Hp), lambda i: (0, 0), pipeline_mode=resident),
            ],
            out_specs=pl.BlockSpec((tn, Hp), lambda i: (i, 0)),
            compiler_params=compiler_params_1d,
        )(x2d, wqkv_t, a_t, lproj_t, wproj_t, bias)
    else:
        tc = force_chunk_cols if force_chunk_cols is not None else \
            _choose_chunk(Hp, r2, tn, wi, xi, budget)
        assert (3 * Hp) % tc == 0 and tc % 128 == 0, "chunk must divide 3*Hp (128-aligned)"
        n_chunks = (3 * Hp) // tc
        out2d = pl.pallas_call(
            lora_attn_chunked_kernel,
            out_shape=jax.ShapeDtypeStruct((N, Hp), x.dtype),
            grid=(n_row_blocks, n_chunks),
            in_specs=[
                pl.BlockSpec((tn, Hp), lambda i, j: (i, 0)),                   # x (resident over j)
                pl.BlockSpec((Hp, tc), lambda i, j: (0, j)),                   # wqkv chunk
                pl.BlockSpec((Hp, r2), lambda i, j: (0, 0), pipeline_mode=resident),
                pl.BlockSpec((r2, Hp), lambda i, j: (0, 0), pipeline_mode=resident),
                pl.BlockSpec((tc, Hp), lambda i, j: (j, 0)),                   # proj chunk
                pl.BlockSpec((1, Hp), lambda i, j: (0, 0), pipeline_mode=resident),
            ],
            out_specs=pl.BlockSpec((tn, Hp), lambda i, j: (i, 0)),
            scratch_shapes=[pltpu.VMEM((tn, Hp), jnp.float32)],
            compiler_params=compiler_params_2d,
        )(x2d, wqkv_t, a_t, lproj_t, wproj_t, bias)

    return out2d[:, :H].reshape(B, S, H)


# --------------------------------------------------------------------------- #
# Synthetic params + pure-JAX reference
# --------------------------------------------------------------------------- #
def init_params(key, hidden, rank=16, alpha=32, zero_init_b=True):
    """Synthetic parameters matching the PyTorch module's shapes/layouts."""
    ks = jax.random.split(key, 8)
    qkv_w = jax.random.normal(ks[0], (3 * hidden, hidden), jnp.float32) * 0.02
    proj_w = jax.random.normal(ks[1], (hidden, 3 * hidden), jnp.float32) * 0.02
    proj_b = jax.random.normal(ks[2], (hidden,), jnp.float32) * 0.02
    bound = 1.0 / math.sqrt(hidden)    # kaiming_uniform_(a=sqrt(5)) over [r, H]
    lora_a_q = jax.random.uniform(ks[3], (rank, hidden), jnp.float32, -bound, bound)
    lora_a_v = jax.random.uniform(ks[4], (rank, hidden), jnp.float32, -bound, bound)
    if zero_init_b:                    # PyTorch module zero-inits lora_B
        lora_b_q = jnp.zeros((hidden, rank), jnp.float32)
        lora_b_v = jnp.zeros((hidden, rank), jnp.float32)
    else:                              # non-zero B so the LoRA path is exercised
        lora_b_q = jax.random.normal(ks[5], (hidden, rank), jnp.float32) * 0.02
        lora_b_v = jax.random.normal(ks[6], (hidden, rank), jnp.float32) * 0.02
    return dict(qkv_w=qkv_w, proj_w=proj_w, proj_b=proj_b,
                lora_a_q=lora_a_q, lora_b_q=lora_b_q,
                lora_a_v=lora_a_v, lora_b_v=lora_b_v,
                rank=rank, alpha=alpha)


def reference_forward(x, p):
    """Pure-JAX f32 reference mirroring the PyTorch forward (eval mode)."""
    H = x.shape[-1]
    scaling = p["alpha"] / p["rank"]
    q = x @ p["qkv_w"][:H, :].T + scaling * ((x @ p["lora_a_q"].T) @ p["lora_b_q"].T)
    k = x @ p["qkv_w"][H:2 * H, :].T
    v = x @ p["qkv_w"][2 * H:, :].T + scaling * ((x @ p["lora_a_v"].T) @ p["lora_b_v"].T)
    attn = jnp.concatenate([q, k, v], axis=-1)
    return attn @ p["proj_w"].T + p["proj_b"]


if __name__ == "__main__":
    B, S, H = 2, 8, 32
    key = jax.random.PRNGKey(0)
    kx, kp = jax.random.split(key)
    x = jax.random.normal(kx, (B, S, H), jnp.float32)
    # zero_init_b=False so the LoRA branch contributes non-zero values.
    params = init_params(kp, H, rank=16, alpha=32, zero_init_b=False)

    prep = prepare_params(
        params["qkv_w"], params["proj_w"], params["proj_b"],
        params["lora_a_q"], params["lora_b_q"],
        params["lora_a_v"], params["lora_b_v"],
        rank=params["rank"], alpha=params["alpha"],
        compute_dtype=jnp.bfloat16)

    ref = reference_forward(x, params)

    # Resident-weight path.
    out = lora_attention_forward(
        x, prep["wqkv_t"], prep["a_t"], prep["lproj_t"], prep["wproj_t"], prep["bias"])
    out = jax.block_until_ready(out)
    assert out.shape == (B, S, H)
    max_diff = float(jnp.max(jnp.abs(out - ref)))
    assert jnp.allclose(out, ref, atol=5e-3, rtol=5e-2), (
        f"resident path mismatch vs reference: max abs diff {max_diff}")

    # Chunked (large-H / v7x) path, forced with small chunks to exercise accumulation.
    out_c = lora_attention_forward(
        x, prep["wqkv_t"], prep["a_t"], prep["lproj_t"], prep["wproj_t"], prep["bias"],
        force_chunk_cols=128)
    out_c = jax.block_until_ready(out_c)
    max_diff_c = float(jnp.max(jnp.abs(out_c - ref)))
    assert jnp.allclose(out_c, ref, atol=5e-3, rtol=5e-2), (
        f"chunked path mismatch vs reference: max abs diff {max_diff_c}")

    print("KERNEL_OK")
</pallas_src>

<mosaic_0001>
module attributes {stable_mosaic.version = 11 : i64} {
  func.func @lora_attn_kernel(%arg0: i32, %arg1: memref<16x128xf32, #tpu.memory_space<vmem>>, %arg2: memref<128x384xbf16, #tpu.memory_space<vmem>>, %arg3: memref<128x32xbf16, #tpu.memory_space<vmem>>, %arg4: memref<32x128xbf16, #tpu.memory_space<vmem>>, %arg5: memref<384x128xbf16, #tpu.memory_space<vmem>>, %arg6: memref<1x128xf32, #tpu.memory_space<vmem>>, %arg7: memref<16x128xf32, #tpu.memory_space<vmem>>) attributes {dimension_semantics = [#tpu.dimension_semantics<parallel>], iteration_bounds = array<i64: 1>, scalar_prefetch = 0 : i64, scratch_operands = 0 : i64, tpu.core_type = #tpu.core_type<tc>, window_params = [{transform_indices = @transform_0, window_bounds = array<i64: 16, 128>}, {pipeline_mode = #tpu.pipeline_mode<synchronous>, transform_indices = @transform_1, window_bounds = array<i64: 128, 384>}, {pipeline_mode = #tpu.pipeline_mode<synchronous>, transform_indices = @transform_2, window_bounds = array<i64: 128, 32>}, {pipeline_mode = #tpu.pipeline_mode<synchronous>, transform_indices = @transform_3, window_bounds = array<i64: 32, 128>}, {pipeline_mode = #tpu.pipeline_mode<synchronous>, transform_indices = @transform_4, window_bounds = array<i64: 384, 128>}, {pipeline_mode = #tpu.pipeline_mode<synchronous>, transform_indices = @transform_5, window_bounds = array<i64: 1, 128>}, {transform_indices = @transform_6, window_bounds = array<i64: 16, 128>}]} {
    %c0 = arith.constant 0 : index
    %c0_0 = arith.constant 0 : index
    %0 = vector.load %arg1[%c0, %c0_0] : memref<16x128xf32, #tpu.memory_space<vmem>>, vector<16x128xf32>
    %1 = arith.truncf %0 : vector<16x128xf32> to vector<16x128xbf16>
    %c0_1 = arith.constant 0 : index
    %c0_2 = arith.constant 0 : index
    %2 = vector.load %arg2[%c0_1, %c0_2] : memref<128x384xbf16, #tpu.memory_space<vmem>>, vector<128x384xbf16>
    %cst = arith.constant dense<0.000000e+00> : vector<16x384xf32>
    %3 = tpu.matmul %1, %2, %cst {dimension_numbers = #tpu.dot_dimension_numbers<[1], [0], [0], [1], [0, 0, 1, 1], [], []>} : vector<16x128xbf16>, vector<128x384xbf16>, vector<16x384xf32> -> vector<16x384xf32>
    %4 = arith.truncf %3 : vector<16x384xf32> to vector<16x384xbf16>
    %c0_3 = arith.constant 0 : index
    %c0_4 = arith.constant 0 : index
    %5 = vector.load %arg5[%c0_3, %c0_4] : memref<384x128xbf16, #tpu.memory_space<vmem>>, vector<384x128xbf16>
    %cst_5 = arith.constant dense<0.000000e+00> : vector<16x128xf32>
    %6 = tpu.matmul %4, %5, %cst_5 {dimension_numbers = #tpu.dot_dimension_numbers<[1], [0], [0], [1], [0, 0, 1, 1], [], []>} : vector<16x384xbf16>, vector<384x128xbf16>, vector<16x128xf32> -> vector<16x128xf32>
    %c0_6 = arith.constant 0 : index
    %c0_7 = arith.constant 0 : index
    %7 = vector.load %arg3[%c0_6, %c0_7] : memref<128x32xbf16, #tpu.memory_space<vmem>>, vector<128x32xbf16>
    %cst_8 = arith.constant dense<0.000000e+00> : vector<16x32xf32>
    %8 = tpu.matmul %1, %7, %cst_8 {dimension_numbers = #tpu.dot_dimension_numbers<[1], [0], [0], [1], [0, 0, 1, 1], [], []>} : vector<16x128xbf16>, vector<128x32xbf16>, vector<16x32xf32> -> vector<16x32xf32>
    %9 = arith.truncf %8 : vector<16x32xf32> to vector<16x32xbf16>
    %c0_9 = arith.constant 0 : index
    %c0_10 = arith.constant 0 : index
    %10 = vector.load %arg4[%c0_9, %c0_10] : memref<32x128xbf16, #tpu.memory_space<vmem>>, vector<32x128xbf16>
    %cst_11 = arith.constant dense<0.000000e+00> : vector<16x128xf32>
    %11 = tpu.matmul %9, %10, %cst_11 {dimension_numbers = #tpu.dot_dimension_numbers<[1], [0], [0], [1], [0, 0, 1, 1], [], []>} : vector<16x32xbf16>, vector<32x128xbf16>, vector<16x128xf32> -> vector<16x128xf32>
    %12 = arith.addf %6, %11 : vector<16x128xf32>
    %c0_12 = arith.constant 0 : index
    %c0_13 = arith.constant 0 : index
    %13 = vector.load %arg6[%c0_12, %c0_13] : memref<1x128xf32, #tpu.memory_space<vmem>>, vector<1x128xf32>
    %14 = vector.broadcast %13 : vector<1x128xf32> to vector<16x128xf32>
    %15 = arith.addf %12, %14 : vector<16x128xf32>
    %c0_14 = arith.constant 0 : index
    %c0_15 = arith.constant 0 : index
    %16 = vector.load %arg7[%c0_14, %c0_15] : memref<16x128xf32, #tpu.memory_space<vmem>>, vector<16x128xf32>
    tpu.vector_store %arg7[%c0_14, %c0_15], %15 {strides = array<i32>} : memref<16x128xf32, #tpu.memory_space<vmem>>, vector<16x128xf32>,
    return
  }
  func.func @transform_0(%arg0: i32) -> (i32, i32) {
    %c0_i32 = arith.constant 0 : i32
    %c0_i32_0 = arith.constant 0 : i32
    return %arg0, %c0_i32 : i32, i32
  }
  func.func @transform_1(%arg0: i32) -> (i32, i32) {
    %c0_i32 = arith.constant 0 : i32
    %c0_i32_0 = arith.constant 0 : i32
    %c0_i32_1 = arith.constant 0 : i32
    return %c0_i32, %c0_i32_0 : i32, i32
  }
  func.func @transform_2(%arg0: i32) -> (i32, i32) {
    %c0_i32 = arith.constant 0 : i32
    %c0_i32_0 = arith.constant 0 : i32
    %c0_i32_1 = arith.constant 0 : i32
    return %c0_i32, %c0_i32_0 : i32, i32
  }
  func.func @transform_3(%arg0: i32) -> (i32, i32) {
    %c0_i32 = arith.constant 0 : i32
    %c0_i32_0 = arith.constant 0 : i32
    %c0_i32_1 = arith.constant 0 : i32
    return %c0_i32, %c0_i32_0 : i32, i32
  }
  func.func @transform_4(%arg0: i32) -> (i32, i32) {
    %c0_i32 = arith.constant 0 : i32
    %c0_i32_0 = arith.constant 0 : i32
    %c0_i32_1 = arith.constant 0 : i32
    return %c0_i32, %c0_i32_0 : i32, i32
  }
  func.func @transform_5(%arg0: i32) -> (i32, i32) {
    %c0_i32 = arith.constant 0 : i32
    %c0_i32_0 = arith.constant 0 : i32
    %c0_i32_1 = arith.constant 0 : i32
    return %c0_i32, %c0_i32_0 : i32, i32
  }
  func.func @transform_6(%arg0: i32) -> (i32, i32) {
    %c0_i32 = arith.constant 0 : i32
    %c0_i32_0 = arith.constant 0 : i32
    return %arg0, %c0_i32 : i32, i32
  }
}

</mosaic_0001>

<bundles_post_ra>
// kernel: lora_attention_forward.1
= control target key start
LH: loop header
LB: loop body
LE: loop exit
PB: predicated region body
PF: predicated region fallthrough
CT: control target
= control target key end

     0   :  { %11 = vsyncpa [#allocation3], 0  ;;  %s1437_s0 = inlined_call_operand.hbm [shape: f32[16,128], index: 0, kind: input, shape index: {}]   ;;  %s1438_s1 = inlined_call_operand.hbm [shape: bf16[128,384], index: 1, kind: input, shape index: {}]   ;;  %s1439_s2 = inlined_call_operand.hbm [shape: bf16[128,32], index: 2, kind: input, shape index: {}]   ;;  %s1440_s3 = inlined_call_operand.hbm [shape: bf16[32,128], index: 3, kind: input, shape index: {}]   ;;  %s1441_s4 = inlined_call_operand.hbm [shape: bf16[384,128], index: 4, kind: input, shape index: {}]   ;;  %s1442_s5 = inlined_call_operand.hbm [shape: f32[1,128], index: 5, kind: input, shape index: {}]   ;;  %s1443_s6 = inlined_call_operand.hbm [shape: f32[16,128], index: 6, kind: output, shape index: {}]  }
   0x1   :  { %12 = vsyncpa [#allocation6], 0 }
   0x2   :  { %13 = vsyncpa [#allocation9], 0 }
   0x3   :  { %14 = vsyncpa [#allocation12], 0 }
   0x4   :  { %15 = vsyncpa [#allocation4], 0  ;;  %s1253_s21 = smov [#allocation5]   ;;  %s1089_s25 = scalar_lea.hbm %s1438_s1, 3072 }
   0x5   :  { %s33_s22 = sshll.u32 %s1253_s21, 4  ;;  %p1090_p0 = scmp.ne.s32.totalorder %s1438_s1, %s1089_s25  ;;  %s34_s22 = int_to_ptr.vmem [resolvable:$true] %s33_s22 }
   0x6   :  { %p1093_p1 = scmp.lt.u32.totalorder %s1089_s25, %s1438_s1 }
   0x8   :  { %p1095_p2 = pnand %p1093_p1, %p1090_p0 }
   0xa   :  { %1098 = shalt.err (!%p1095_p2)
}
   0xb   :  { %s1099_s30 = scalar_lea.vmem %s34_s22, 3072  ;;  %p1104_p4 = scmp.lt.s32.totalorder %s34_s22, %s34_s22 }
   0xc   :  { %p1100_p3 = scmp.ne.s32.totalorder %s34_s22, %s1099_s30  ;;  %p1105_p5 = scmp.lt.s32.totalorder %s1099_s30, %s1099_s30 }
   0xe   :  { %p1106_p6 = por %p1105_p5, %p1104_p4 }
  0x10   :  { %p1107_p7 = pnand %p1106_p6, %p1100_p3 }
  0x12   :  { %1110 = shalt.err (!%p1107_p7)
}
  0x13   :  { %s1254_s7 = smov 192   ;;  %s1255_s8 = smov 12  }
  0x14   :  { %39 = dma.hbm_to_vmem [thread:$0]  %s1438_s1, 3072, %s34_s22, [#allocation6], %s1254_s7, %s1254_s7, %s1255_s8  }
  0x15   :  { %s1256_s11 = smov [#allocation8]   ;;  %s1257_s13 = smov [#allocation2]  }
  0x16   :  { %s57_s12 = sshll.u32 %s1256_s11, 4  ;;  %s21_s14 = sshll.u32 %s1257_s13, 4  ;;  %s58_s12 = int_to_ptr.vmem [resolvable:$true] %s57_s12  ;;  %s22_s14 = int_to_ptr.vmem [resolvable:$true] %s21_s14 }
  0x17   :  { %s1111_s17 = scalar_lea.hbm %s1440_s3, 256 }
  0x18   :  { %p1112_p8 = scmp.ne.s32.totalorder %s1440_s3, %s1111_s17  ;;  %p1115_p9 = scmp.lt.u32.totalorder %s1111_s17, %s1440_s3 }
  0x1a   :  { %p1117_p10 = pnand %p1115_p9, %p1112_p8 }
  0x1c   :  { %1120 = shalt.err (!%p1117_p10)
}
  0x1d   :  { %s1121_s1 = scalar_lea.vmem %s58_s12, 256  ;;  %p1126_p12 = scmp.lt.s32.totalorder %s58_s12, %s58_s12 }
  0x1e   :  { %p1122_p11 = scmp.ne.s32.totalorder %s58_s12, %s1121_s1  ;;  %p1127_p13 = scmp.lt.s32.totalorder %s1121_s1, %s1121_s1 }
  0x20   :  { %p1128_p0 = por %p1127_p13, %p1126_p12 }
  0x22   :  { %p1129_p1 = pnand %p1128_p0, %p1122_p11 }
  0x24   :  { %1132 = shalt.err (!%p1129_p1)
}
  0x25   :  { %s1258_s22 = smov 64   ;;  %s1259_s23 = smov 4  }
  0x26   :  { %63 = dma.hbm_to_vmem [thread:$0]  %s1440_s3, 256, %s58_s12, [#allocation9], %s1258_s22, %s1258_s22, %s1259_s23  }
  0x27   :  { %s1133_s28 = scalar_lea.hbm %s1437_s0, 256 }
  0x28   :  { %p1134_p2 = scmp.ne.s32.totalorder %s1437_s0, %s1133_s28  ;;  %p1137_p3 = scmp.lt.u32.totalorder %s1133_s28, %s1437_s0 }
  0x2a   :  { %p1139_p4 = pnand %p1137_p3, %p1134_p2 }
  0x2c   :  { %1142 = shalt.err (!%p1139_p4)
}
  0x2d   :  { %s1143_s9 = scalar_lea.vmem %s22_s14, 256  ;;  %p1148_p6 = scmp.lt.s32.totalorder %s22_s14, %s22_s14 }
  0x2e   :  { %p1144_p5 = scmp.ne.s32.totalorder %s22_s14, %s1143_s9  ;;  %p1149_p7 = scmp.lt.s32.totalorder %s1143_s9, %s1143_s9 }
  0x30   :  { %p1150_p8 = por %p1149_p7, %p1148_p6 }
  0x32   :  { %p1151_p9 = pnand %p1150_p8, %p1144_p5 }
  0x34   :  { %1154 = shalt.err (!%p1151_p9)
}
  0x35   :  { %s1260_s3 = smov 128   ;;  %s1261_s10 = smov 8  }
  0x36   :  { %27 = dma.hbm_to_vmem [thread:$0]  %s1437_s0, 256, %s22_s14, [#allocation3], %s1260_s3, %s1260_s3, %s1261_s10  }
  0x37   :  { %s1262_s13 = smov [#allocation7]   ;;  %s1263_s16 = smov [#allocation10]  }
  0x38   :  { %s45_s15 = sshll.u32 %s1262_s13, 4  ;;  %s69_s17 = sshll.u32 %s1263_s16, 4  ;;  %s46_s15 = int_to_ptr.vmem [resolvable:$true] %s45_s15  ;;  %s70_s17 = int_to_ptr.vmem [resolvable:$true] %s69_s17 }
  0x39   :  { %s1155_s20 = scalar_lea.hbm %s1439_s2, 1024 }
  0x3a   :  { %p1156_p10 = scmp.ne.s32.totalorder %s1439_s2, %s1155_s20  ;;  %p1159_p11 = scmp.lt.u32.totalorder %s1155_s20, %s1439_s2 }
  0x3c   :  { %p1161_p12 = pnand %p1159_p11, %p1156_p10 }
  0x3e   :  { %1164 = shalt.err (!%p1161_p12)
}
  0x3f   :  { %s1165_s0 = scalar_lea.vmem %s46_s15, 1024  ;;  %p1170_p0 = scmp.lt.s32.totalorder %s46_s15, %s46_s15 }
  0x40   :  { %p1166_p13 = scmp.ne.s32.totalorder %s46_s15, %s1165_s0  ;;  %p1171_p1 = scmp.lt.s32.totalorder %s1165_s0, %s1165_s0 }
  0x42   :  { %p1172_p2 = por %p1171_p1, %p1170_p0 }
  0x44   :  { %p1173_p3 = pnand %p1172_p2, %p1166_p13 }
  0x46   :  { %1176 = shalt.err (!%p1173_p3)
}
  0x47   :  { %51 = dma.hbm_to_vmem [thread:$0]  %s1439_s2, 1024, %s46_s15, [#allocation6], %s1258_s22, %s1258_s22, %s1259_s23  }
  0x48   :  { %s1177_s29 = scalar_lea.hbm %s1441_s4, 3072 }
  0x49   :  { %p1178_p4 = scmp.ne.s32.totalorder %s1441_s4, %s1177_s29  ;;  %p1181_p5 = scmp.lt.u32.totalorder %s1177_s29, %s1441_s4 }
  0x4b   :  { %p1183_p6 = pnand %p1181_p5, %p1178_p4 }
  0x4d   :  { %1186 = shalt.err (!%p1183_p6)
}
  0x4e   :  { %s1187_s11 = scalar_lea.vmem %s70_s17, 3072  ;;  %p1192_p8 = scmp.lt.s32.totalorder %s70_s17, %s70_s17 }
  0x4f   :  { %p1188_p7 = scmp.ne.s32.totalorder %s70_s17, %s1187_s11  ;;  %p1193_p9 = scmp.lt.s32.totalorder %s1187_s11, %s1187_s11 }
  0x51   :  { %p1194_p10 = por %p1193_p9, %p1192_p8 }
  0x53   :  { %p1195_p11 = pnand %p1194_p10, %p1188_p7 }
  0x55   :  { %1198 = shalt.err (!%p1195_p11)
}
  0x56   :  { %75 = dma.hbm_to_vmem [thread:$0]  %s1441_s4, 3072, %s70_s17, [#allocation9], %s1258_s22, %s1258_s22, %s1259_s23  }
  0x57   :  { %s1264_s13 = smov [#allocation11]   ;;  %s1199_s19 = scalar_lea.hbm %s1442_s5, 16 }
  0x58   :  { %s82_s15 = sshll.u32 %s1264_s13, 4  ;;  %p1200_p12 = scmp.ne.s32.totalorder %s1442_s5, %s1199_s19  ;;  %s83_s15 = int_to_ptr.vmem [resolvable:$true] %s82_s15 }
  0x59   :  { %p1203_p13 = scmp.lt.u32.totalorder %s1199_s19, %s1442_s5 }
  0x5b   :  { %p1205_p0 = pnand %p1203_p13, %p1200_p12 }
  0x5d   :  { %1208 = shalt.err (!%p1205_p0)
}
  0x5e   :  { %s1209_s25 = scalar_lea.vmem %s83_s15, 16  ;;  %s1213_s4 = scalar_lea.vmem %s83_s15, 32 }
  0x5f   :  { %p1210_p1 = scmp.ne.s32.totalorder %s83_s15, %s1209_s25  ;;  %p1214_p2 = scmp.lt.s32.totalorder %s83_s15, %s83_s15 }
  0x60   :  { %p1215_p3 = scmp.lt.s32.totalorder %s1213_s4, %s1209_s25 }
  0x62   :  { %p1216_p4 = por %p1215_p3, %p1214_p2 }
  0x64   :  { %p1217_p5 = pnand %p1216_p4, %p1210_p1 }
  0x66   :  { %1220 = shalt.err (!%p1217_p5)
}
  0x67   :  { %85 = dma.hbm_to_vmem [thread:$0]  %s1442_s5, 16, %s83_s15, [#allocation12]  }
  0x68   :  { %1243 = dma.done.wait [#allocation3], 256  }
  0x69   :  { %1244 = vsyncadd [#allocation3], 4294967040 }
  0x6a   :  { %1245 = dma.done.wait [#allocation6], 4096  }
  0x6b   :  { %1246 = vsyncadd [#allocation6], 4294963200 }
  0x6c   :  { %1247 = dma.done.wait [#allocation9], 3328  }
  0x6d   :  { %1248 = vsyncadd [#allocation9], 4294963968 }
  0x6e   :  { %1249 = dma.done.wait [#allocation12], 16  }
  0x6f   :  { %1250 = vsyncadd [#allocation12], 4294967280  ;;  %v1265_v0 = vmov 0   ;;  %v1266_v1 = vmov 0.0   ;;  %vm1267_vm0 = vmmov 0   ;;  %v105_v20 = vld [vmem:[#allocation2] sm:$0xff] }
  0x70   :  { %300 = vmatprep.mubr.bf16.mxu0 %v1265_v0  ;;  %939 = vmatprep.subr.bf16.mxu1 %v1266_v1  ;;  %v1023_v2 = vld [vmem:[#allocation5 + $0x4] ss:$12 sps:$4 sm:$0xff]   ;;  %v1025_v3 = vld [vmem:[#allocation5] ss:$12 sps:$4 sm:$0xff]   ;;  %v1026_v4 = vld [vmem:[#allocation5 + $0x1c] ss:$12 sps:$4 sm:$0xff]  }
  0x71   :  { %955 = vmatprep.mubr.msk.bf16.mxu1 %vm1267_vm0, %v1266_v1  ;;  %268 = vmatprep.subr.bf16.mxu0 %v1023_v2  ;;  %v1028_v5 = vld [vmem:[#allocation5 + $0x18] ss:$12 sps:$4 sm:$0xff]   ;;  %v1029_v6 = vld [vmem:[#allocation5 + $0x34] ss:$12 sps:$4 sm:$0xff]   ;;  %v1031_v7 = vld [vmem:[#allocation5 + $0x30] ss:$12 sps:$4 sm:$0xff]  }
  0x72   :  { %269 = vmatpush1.bf16.msra.mxu0 %v1025_v3  ;;  %v1032_v8 = vld [vmem:[#allocation5 + $0x4c] ss:$12 sps:$4 sm:$0xff]   ;;  %v1034_v9 = vld [vmem:[#allocation5 + $0x48] ss:$12 sps:$4 sm:$0xff]   ;;  %v1035_v10 = vld [vmem:[#allocation5 + $0x64] ss:$12 sps:$4 sm:$0xff]  }
  0x73   :  { %270 = vmatprep.subr.bf16.mxu0 %v1026_v4  ;;  %v1037_v11 = vld [vmem:[#allocation5 + $0x60] ss:$12 sps:$4 sm:$0xff]   ;;  %v1038_v12 = vld [vmem:[#allocation5 + $0x7c] ss:$12 sps:$4 sm:$0xff]   ;;  %v1040_v13 = vld [vmem:[#allocation5 + $0x78] ss:$12 sps:$4 sm:$0xff]  }
  0x74   :  { %v1041_v14 = vld [vmem:[#allocation5 + $0x94] ss:$12 sps:$4 sm:$0xff]   ;;  %v1043_v17 = vld [vmem:[#allocation5 + $0x90] ss:$12 sps:$4 sm:$0xff]   ;;  %v1044_v18 = vld [vmem:[#allocation5 + $0xac] ss:$12 sps:$4 sm:$0xff]  }
  0x75   :  { %v1055_v15 = vld [vmem:[#allocation5 + $0x8] ss:$12 sps:$4 sm:$0xff]   ;;  %v1056_v16 = vld [vmem:[#allocation5 + $0x20] ss:$12 sps:$4 sm:$0xff]   ;;  %v1057_v21 = vld [vmem:[#allocation5 + $0x38] ss:$12 sps:$4 sm:$0xff]  }
  0x76   :  { %271 = vmatpush1.bf16.msra.mxu0 %v1028_v5  ;;  %940 = vmatpush3.bf16.msra.mxu1 %v1055_v15  ;;  %v1046_v19 = vld [vmem:[#allocation5 + $0xa8] ss:$12 sps:$4 sm:$0xff]   ;;  %v106_v22 = vld [vmem:[#allocation2 + $0x8] sm:$0xff]  ;;  %v1047_v24 = vld [vmem:[#allocation7] sm:$0xff]   ;;  %vm525_vm1 = vcmask 261120   ;;  %s1268_s5 = smov [#allocation13]  }
  0x77   :  { %272 = vmatprep.subr.bf16.mxu0 %v1029_v6  ;;  %941 = vmatprep.subr.bf16.mxu1 %v1266_v1  ;;  %v1058_v23 = vld [vmem:[#allocation5 + $0x50] ss:$12 sps:$4 sm:$0xff]   ;;  %v107_v25 = vpack.c.bf16 %v106_v22, %v105_v20  ;;  %v1059_v26 = vld [vmem:[#allocation5 + $0x68] ss:$12 sps:$4 sm:$0xff]   ;;  %v1060_v28 = vld [vmem:[#allocation5 + $0x80] ss:$12 sps:$4 sm:$0xff]  }
  0x78   :  { %v1048_v27 = vld [vmem:[#allocation7 + $0x8] sm:$0xff]   ;;  %v1049_v29 = vld [vmem:[#allocation7 + $0x10] sm:$0xff]   ;;  %v1061_v30 = vld [vmem:[#allocation5 + $0x98] ss:$12 sps:$4 sm:$0xff]   ;;  %s812_s17 = sshll.u32 %s1268_s5, 4  ;;  %s813_s17 = int_to_ptr.vmem [resolvable:$true] %s812_s17 }
  0x79   :  { %v1050_v31 = vld [vmem:[#allocation7 + $0x18] sm:$0xff]   ;;  %v1051_v33 = vld [vmem:[#allocation7 + $0x20] sm:$0xff]   ;;  %v1052_v34 = vld [vmem:[#allocation7 + $0x28] sm:$0xff]   ;;  %s1221_s0 = scalar_lea.vmem %s813_s17, 256  ;;  %p1226_p7 = scmp.lt.s32.totalorder %s813_s17, %s813_s17 }
  0x7a   :  { %273 = vmatpush1.bf16.msra.mxu0 %v1031_v7  ;;  %942 = vmatpush3.bf16.msra.mxu1 %v1056_v16  ;;  %v1062_v32 = vld [vmem:[#allocation5 + $0xb0] ss:$12 sps:$4 sm:$0xff]   ;;  %v1063_v37 = vld [vmem:[#allocation8] sm:$0xff]   ;;  %v1064_v38 = vld [vmem:[#allocation8 + $0x8] sm:$0xff]   ;;  %p1222_p6 = scmp.ne.s32.totalorder %s813_s17, %s1221_s0  ;;  %p1227_p8 = scmp.lt.s32.totalorder %s1221_s0, %s1221_s0 }
  0x7b   :  { %274 = vmatprep.subr.bf16.mxu0 %v1032_v8  ;;  %943 = vmatprep.subr.bf16.mxu1 %v1266_v1  ;;  %v1053_v35 = vld [vmem:[#allocation7 + $0x30] sm:$0xff]   ;;  %v1054_v36 = vld [vmem:[#allocation7 + $0x38] sm:$0xff]   ;;  %v1073_v42 = vld [vmem:[#allocation10 + $0x90] sm:$0xff]  }
  0x7c   :  { %v1065_v39 = vld [vmem:[#allocation10 + $0x40] sm:$0xff]   ;;  %v1070_v41 = vld [vmem:[#allocation10 + $0x88] sm:$0xff]   ;;  %v1076_v43 = vld [vmem:[#allocation10 + $0x98] sm:$0xff]   ;;  %p1228_p9 = por %p1227_p8, %p1226_p7 }
  0x7d   :  { %v1067_v40 = vld [vmem:[#allocation10 + $0x80] sm:$0xff]   ;;  %v1082_v45 = vld [vmem:[#allocation10 + $0xa8] sm:$0xff]   ;;  %v1085_v46 = vld [vmem:[#allocation10 + $0xb0] sm:$0xff]  }
  0x7e   :  { %275 = vmatpush1.bf16.msra.mxu0 %v1034_v9  ;;  %944 = vmatpush3.bf16.msra.mxu1 %v1057_v21  ;;  %v1079_v44 = vld [vmem:[#allocation10 + $0xa0] sm:$0xff]   ;;  %v1088_v47 = vld [vmem:[#allocation10 + $0xb8] sm:$0xff]   ;;  %v1069_v2 = vld [vmem:[#allocation10 + $0x8] sm:$0xff]   ;;  %p1229_p10 = pnand %p1228_p9, %p1222_p6 }
  0x7f   :  { %276 = vmatprep.subr.bf16.mxu0 %v1035_v10  ;;  %945 = vmatprep.subr.bf16.mxu1 %v1266_v1  ;;  %v1066_v62 = vld [vmem:[#allocation10] sm:$0xff]   ;;  %v1071_v3 = vld [vmem:[#allocation10 + $0x50] sm:$0xff]   ;;  %v1074_v5 = vld [vmem:[#allocation10 + $0x58] sm:$0xff]  }
  0x80   :  { %v1072_v4 = vld [vmem:[#allocation10 + $0x10] sm:$0xff]   ;;  %v1075_v6 = vld [vmem:[#allocation10 + $0x18] sm:$0xff]   ;;  %v1077_v7 = vld [vmem:[#allocation10 + $0x60] sm:$0xff]  }
  0x81   :  { %v1078_v8 = vld [vmem:[#allocation10 + $0x20] sm:$0xff]   ;;  %v1080_v9 = vld [vmem:[#allocation10 + $0x68] sm:$0xff]  }
  0x82   :  { %277 = vmatpush1.bf16.msra.mxu0 %v1037_v11  ;;  %946 = vmatpush3.bf16.msra.mxu1 %v1058_v23  ;;  %v1081_v10 = vld [vmem:[#allocation10 + $0x28] sm:$0xff]   ;;  %v1083_v11 = vld [vmem:[#allocation10 + $0x70] sm:$0xff]  }
  0x83   :  { %278 = vmatprep.subr.bf16.mxu0 %v1038_v12  ;;  %947 = vmatprep.subr.bf16.mxu1 %v1266_v1  ;;  %v1084_v12 = vld [vmem:[#allocation10 + $0x30] sm:$0xff]  }
  0x86   :  { %279 = vmatpush1.bf16.msra.mxu0 %v1040_v13  ;;  %948 = vmatpush3.bf16.msra.mxu1 %v1059_v26  ;;  %v1086_v13 = vld [vmem:[#allocation10 + $0x78] sm:$0xff]  }
  0x87   :  { %280 = vmatprep.subr.bf16.mxu0 %v1041_v14  ;;  %949 = vmatprep.subr.bf16.mxu1 %v1266_v1  ;;  %v1087_v14 = vld [vmem:[#allocation10 + $0x38] sm:$0xff]  }
  0x8a   :  { %281 = vmatpush1.bf16.msra.mxu0 %v1043_v17  ;;  %950 = vmatpush3.bf16.msra.mxu1 %v1060_v28 }
  0x8b   :  { %282 = vmatprep.subr.bf16.mxu0 %v1044_v18  ;;  %951 = vmatprep.subr.bf16.mxu1 %v1266_v1 }
  0x8e   :  { %283 = vmatpush1.bf16.msra.mxu0 %v1046_v19  ;;  %952 = vmatpush3.bf16.msra.mxu1 %v1061_v30  ;;  %v886_v30 = vld [vmem:[#allocation11] ss:$0 sm:$0xff] }
  0x8f   :  { %959 = vmatprep.subr.bf16.mxu0 %v1266_v1  ;;  %953 = vmatprep.subr.bf16.mxu1 %v1266_v1 }
  0x91   :  { %301 = vmatmul.mubr.bf16.vlgmr.msra.gmra.mrb[0].mxu0 %v107_v25 }
  0x92   :  { %960 = vmatpush3.bf16.msra.mxu0 %v1047_v24  ;;  %975 = vmatprep.mubr.msk.bf16.mxu0 %vm1267_vm0, %v1266_v1 }
  0x93   :  { %961 = vmatprep.subr.bf16.mxu0 %v1266_v1  ;;  %954 = vmatpush3.bf16.msra.mxu1 %v1062_v32 }
  0x94   :  { %979 = vmatprep.subr.bf16.mxu1 %v1266_v1 }
  0x96   :  { %962 = vmatpush3.bf16.msra.mxu0 %v1048_v27  ;;  %956 = vmatmul.mubr.bf16.vlgmr.msra.gmra.mrb[0].mxu1 %v107_v25 }
  0x97   :  { %963 = vmatprep.subr.bf16.mxu0 %v1266_v1  ;;  %983 = vmatprep.mubr.msk.bf16.mxu1 %vm1267_vm0, %v1266_v1 }
  0x98   :  { %980 = vmatpush3.bf16.msra.mxu1 %v1063_v37 }
  0x99   :  { %981 = vmatprep.subr.bf16.mxu1 %v1266_v1 }
  0x9a   :  { %964 = vmatpush3.bf16.msra.mxu0 %v1049_v29 }
  0x9b   :  { %965 = vmatprep.subr.bf16.mxu0 %v1266_v1 }
  0x9c   :  { %982 = vmatpush3.bf16.msra.mxu1 %v1064_v38 }
  0x9d   :  { %908 = vmatprep.subr.bf16.mxu1 %v1065_v39 }
  0x9e   :  { %966 = vmatpush3.bf16.msra.mxu0 %v1050_v31 }
  0x9f   :  { %967 = vmatprep.subr.bf16.mxu0 %v1266_v1 }
  0xa2   :  { %968 = vmatpush3.bf16.msra.mxu0 %v1051_v33 }
  0xa3   :  { %969 = vmatprep.subr.bf16.mxu0 %v1266_v1 }
  0xa6   :  { %970 = vmatpush3.bf16.msra.mxu0 %v1052_v34 }
  0xa7   :  { %971 = vmatprep.subr.bf16.mxu0 %v1266_v1 }
  0xaa   :  { %972 = vmatpush3.bf16.msra.mxu0 %v1053_v35 }
  0xab   :  { %973 = vmatprep.subr.bf16.mxu0 %v1266_v1 }
  0xae   :  { %974 = vmatpush3.bf16.msra.mxu0 %v1054_v36 }
  0xaf   :  { %987 = vmatprep.subr.bf16.mxu0 %v1266_v1 }
  0xb1   :  { %976 = vmatmul.mubr.bf16.vlgmr.msra.gmra.mrb[4].mxu0 %v107_v25 }
  0xb2   :  { %1003 = vmatprep.mubr.msk.bf16.mxu0 %vm1267_vm0, %v1266_v1  ;;  %988 = vmatpush3.bf16.msra.mxu0 %v1067_v40 }
  0xb3   :  { %989 = vmatprep.subr.bf16.mxu0 %v1266_v1 }
  0xb6   :  { %990 = vmatpush3.bf16.msra.mxu0 %v1070_v41 }
  0xb7   :  { %991 = vmatprep.subr.bf16.mxu0 %v1266_v1 }
  0xba   :  { %992 = vmatpush3.bf16.msra.mxu0 %v1073_v42 }
  0xbb   :  { %993 = vmatprep.subr.bf16.mxu0 %v1266_v1 }
  0xbe   :  { %994 = vmatpush3.bf16.msra.mxu0 %v1076_v43 }
  0xbf   :  { %995 = vmatprep.subr.bf16.mxu0 %v1266_v1 }
  0xc2   :  { %996 = vmatpush3.bf16.msra.mxu0 %v1079_v44 }
  0xc3   :  { %997 = vmatprep.subr.bf16.mxu0 %v1266_v1 }
  0xc6   :  { %998 = vmatpush3.bf16.msra.mxu0 %v1082_v45 }
  0xc7   :  { %999 = vmatprep.subr.bf16.mxu0 %v1266_v1 }
  0xca   :  { %1000 = vmatpush3.bf16.msra.mxu0 %v1085_v46 }
  0xcb   :  { %1001 = vmatprep.subr.bf16.mxu0 %v1266_v1  ;;  %v1068_v1 = vld [vmem:[#allocation10 + $0x48] sm:$0xff]  }
  0xce   :  { %1002 = vmatpush3.bf16.msra.mxu0 %v1088_v47 }
 0x164   :  { %v302_v48 = vpop.f32.mrb[0].mxu0 }
 0x165   :  { %v304_v49 = vpop.f32.mrb[1].mxu0 }
 0x166   :  { %v306_v50 = vpop.f32.mrb[2].mxu0 }
 0x167   :  { %v352_v51 = vpack.c.bf16 %v306_v50, %v302_v48  ;;  %v308_v52 = vpop.f32.mrb[3].mxu0 }
 0x168   :  { %v353_v53 = vpack.c.bf16 %v308_v52, %v304_v49 }
 0x169   :  { %v345_v54 = vpop.f32.mrb[0].mxu1 }
 0x16a   :  { %v957_v55 = vpop.f32.mrb[1].mxu1 }
 0x16b   :  { %v348_v56 = vpop.f32.mrb[2].mxu1 }
 0x16c   :  { %v354_v57 = vpack.c.bf16 %v348_v56, %v345_v54  ;;  %v958_v58 = vpop.f32.mrb[3].mxu1 }
 0x16e   :  { %1004 = vmatmul.mubr.bf16.vlgmr.msra.gmra.mrb[8].mxu0 %v354_v57 }
 0x184   :  { %v501_v59 = vpop.f32.mrb[4].mxu0 }
 0x185   :  { %v977_v60 = vpop.f32.mrb[5].mxu0 }
 0x186   :  { %v504_v61 = vpop.f32.mrb[6].mxu0 }
 0x187   :  { %v508_v63 = vpack.c.bf16 %v504_v61, %v501_v59  ;;  %v978_v0 = vpop.f32.mrb[7].mxu0 }
 0x189   :  { %984 = vmatmul.mubr.msk.bf16.vlgmr.msra.gmra.mrb[4].mxu1 %vm525_vm1, %v508_v63 }
 0x18a   :  { %909 = vmatpush3.bf16.msra.mxu1 %v1066_v62  ;;  %746 = vmatprep.mubr.bf16.mxu1 %v353_v53 }
 0x18b   :  { %910 = vmatprep.subr.bf16.mxu1 %v1068_v1 }
 0x18e   :  { %911 = vmatpush3.bf16.msra.mxu1 %v1069_v2 }
 0x18f   :  { %912 = vmatprep.subr.bf16.mxu1 %v1071_v3 }
 0x192   :  { %913 = vmatpush3.bf16.msra.mxu1 %v1072_v4 }
 0x193   :  { %914 = vmatprep.subr.bf16.mxu1 %v1074_v5 }
 0x196   :  { %915 = vmatpush3.bf16.msra.mxu1 %v1075_v6 }
 0x197   :  { %916 = vmatprep.subr.bf16.mxu1 %v1077_v7 }
 0x19a   :  { %917 = vmatpush3.bf16.msra.mxu1 %v1078_v8 }
 0x19b   :  { %918 = vmatprep.subr.bf16.mxu1 %v1080_v9 }
 0x19e   :  { %919 = vmatpush3.bf16.msra.mxu1 %v1081_v10 }
 0x19f   :  { %920 = vmatprep.subr.bf16.mxu1 %v1083_v11 }
 0x1a2   :  { %921 = vmatpush3.bf16.msra.mxu1 %v1084_v12 }
 0x1a3   :  { %922 = vmatprep.subr.bf16.mxu1 %v1086_v13 }
 0x1a6   :  { %923 = vmatpush3.bf16.msra.mxu1 %v1087_v14 }
 0x1a9   :  { %747 = vmatmul.mubr.bf16.vlgmr.msra.gmra.mrb[8].mxu1 %v352_v51 }
 0x241   :  { %v789_v15 = vpop.f32.mrb[8].mxu0 }
 0x242   :  { %v1005_v16 = vpop.f32.mrb[9].mxu0 }
 0x243   :  { %v792_v17 = vpop.f32.mrb[10].mxu0 }
 0x244   :  { %v1006_v18 = vpop.f32.mrb[11].mxu0 }
 0x25c   :  { %v563_v19 = vpop.f32.mrb[4].mxu1 }
 0x25d   :  { %v985_v20 = vpop.f32.mrb[5].mxu1 }
 0x25e   :  { %v566_v21 = vpop.f32.mrb[6].mxu1 }
 0x25f   :  { %v986_v22 = vpop.f32.mrb[7].mxu1 }
 0x27c   :  { %v924_v23 = vpop.f32.mrb[8].mxu1 }
 0x27d   :  { %v925_v24 = vpop.f32.mrb[9].mxu1 }
 0x27e   :  { %v926_v25 = vadd.f32 %v925_v24, %v924_v23  ;;  %v927_v26 = vpop.f32.mrb[10].mxu1 }
 0x27f   :  { %v928_v27 = vpop.f32.mrb[11].mxu1 }
 0x280   :  { %v749_v28 = vadd.f32 %v926_v25, %v563_v19  ;;  %v929_v29 = vadd.f32 %v928_v27, %v927_v26 }
 0x282   :  { %v790_v31 = vadd.f32 %v789_v15, %v749_v28  ;;  %v752_v32 = vadd.f32 %v929_v29, %v566_v21 }
 0x284   :  { %v793_v33 = vadd.f32 %v792_v17, %v752_v32  ;;  %v803_v34 = vadd.f32 %v886_v30, %v790_v31 }
 0x286   :  { %v804_v35 = vadd.f32 %v886_v30, %v793_v33  ;;  %805 = vst [vmem:[#allocation13] sm:$0xff] %v803_v34 }
 0x288   :  { %806 = vst [vmem:[#allocation13 + $0x8] sm:$0xff] %v804_v35 }
 0x289   :  { %1232 = shalt.err (!%p1229_p10)
}
 0x28a   :  { %s1233_s27 = scalar_lea.hbm %s1443_s6, 256 }
 0x28b   :  { %p1234_p11 = scmp.ne.s32.totalorder %s1443_s6, %s1233_s27  ;;  %p1237_p12 = scmp.lt.u32.totalorder %s1233_s27, %s1443_s6 }
 0x28d   :  { %p1239_p13 = pnand %p1237_p12, %p1234_p11 }
 0x28f   :  { %1242 = shalt.err (!%p1239_p13)
}
 0x290   :  { %818 = dma.vmem_to_hbm [thread:$0]  %s813_s17, 256, %s1443_s6, [#allocation4], %s1260_s3, %s1260_s3, %s1261_s10  }
 0x291   :  { %1251 = dma.done.wait [#allocation4], 256  }
 0x292   :  { %1252 = vsyncadd [#allocation4], 4294967040 }
 0x293   :  { %822 = vsyncpa [#allocation3], 1 }
 0x294   :  { %823 = vsyncpa [#allocation6], 1 }
 0x295   :  { %824 = vsyncpa [#allocation9], 1 }
 0x296   :  { %825 = vsyncpa [#allocation12], 1 }
 0x297   :  { %826 = vsyncpa [#allocation4], 1 }

</bundles_post_ra>
